<compile_context>
chip_gen: v6e
topology: v6e:2x2x1
jax: 0.10.0
libtpu: 0.0.40
codegen_flags: <defaults>
</compile_context>

<pallas_src>
import jax
import jax.numpy as jnp
from jax.experimental import pallas as pl
from jax.experimental.pallas import tpu as pltpu

MAX_TB = 1024      # batch-tile cap (double-buffered tiles are still tiny vs VMEM)
SPLIT_MIN = 128    # once B_pad >= 2*SPLIT_MIN, use >=2 grid steps (v7x 2-TC sharding)
SUBLANE = 8        # f32 sublane alignment for second-to-last block dims


def _round_up(n, m):
    return ((n + m - 1) // m) * m


def _choose_tb(batch):
    """Batch tile: as large as possible, but >=2 grid steps for big batches."""
    bp = _round_up(batch, SUBLANE)
    if bp < 2 * SPLIT_MIN:
        return bp                                   # single tile; overhead-dominated anyway
    return min(MAX_TB, _round_up(pl.cdiv(bp, 2), SUBLANE))


def _mlp_kernel(x_ref, w1_ref, b1_ref, w2_ref, b2_ref, w3_ref, b3_ref, o_ref):
    # One batch tile per grid step; weights/biases are VMEM-resident (constant index_map).
    x = x_ref[...].astype(jnp.bfloat16)                                # [TB, S] cast in-kernel
    h1 = jnp.dot(x, w1_ref[...], preferred_element_type=jnp.float32)   # MXU, f32 acc
    h1 = jnp.maximum(h1 + b1_ref[...], 0.0)                            # [TB, 64] f32
    h2 = jnp.dot(h1.astype(jnp.bfloat16), w2_ref[...],
                 preferred_element_type=jnp.float32)
    h2 = jnp.maximum(h2 + b2_ref[...], 0.0)                            # [TB, 64] f32
    q = jnp.dot(h2.astype(jnp.bfloat16), w3_ref[...],
                preferred_element_type=jnp.float32)
    o_ref[...] = (q + b3_ref[...]).astype(o_ref.dtype)                 # [TB, A] f32 — only useful bytes


def prepare_params(params):
    """One-time weight prep, hoisted out of the per-call path (store the result)."""
    return dict(
        w1=params["w1"].astype(jnp.bfloat16),
        b1=params["b1"].astype(jnp.float32),
        w2=params["w2"].astype(jnp.bfloat16),
        b2=params["b2"].astype(jnp.float32),
        w3=params["w3"].astype(jnp.bfloat16),
        b3=params["b3"].astype(jnp.float32),
    )


def _network_forward(x, prepared):
    """x: [B, state_size] float32. prepared: output of prepare_params()."""
    w1, b1, w2, b2, w3, b3 = (prepared[k] for k in ("w1", "b1", "w2", "b2", "w3", "b3"))
    B, S = x.shape
    H = w1.shape[1]
    A = w3.shape[1]

    TB = _choose_tb(B)
    B_pad = _round_up(B, TB)
    xp = x if B_pad == B else jnp.pad(x, ((0, B_pad - B), (0, 0)))

    const = lambda i: (0, 0)  # weights/biases: same block every step -> VMEM-resident
    weight_bytes = 2 * (S * H + H * H + H * A) + 4 * (H + H + A)
    out_padded = pl.pallas_call(
        _mlp_kernel,
        out_shape=jax.ShapeDtypeStruct((B_pad, A), jnp.float32),
        grid=(B_pad // TB,),
        in_specs=[
            pl.BlockSpec((TB, S), lambda i: (i, 0)),   # x tile (unpadded feature dim)
            pl.BlockSpec((S, H), const),               # w1
            pl.BlockSpec((1, H), const),               # b1
            pl.BlockSpec((H, H), const),               # w2
            pl.BlockSpec((1, H), const),               # b2
            pl.BlockSpec((H, A), const),               # w3 (unpadded output dim)
            pl.BlockSpec((1, A), const),               # b3
        ],
        out_specs=pl.BlockSpec((TB, A), lambda i: (i, 0)),
        compiler_params=pltpu.CompilerParams(
            dimension_semantics=("parallel",),         # 2-TC sharding on v7x
        ),
        cost_estimate=pl.CostEstimate(
            flops=2 * B_pad * (S * H + H * H + H * A),
            transcendentals=0,
            bytes_accessed=B_pad * S * 4 + B_pad * A * 4 + weight_bytes,
        ),
    )(xp, w1, b1, w2, b2, w3, b3)

    return out_padded if B_pad == B else out_padded[:B]


# Jitted so the (optional) row pad, pallas_call and row slice fuse into one dispatch.
network_forward = jax.jit(_network_forward)


@jax.jit
def network_forward_xla(x, prepared):
    """Plain fused-XLA path: lowest latency for tiny act()-style batches (B <= ~32)."""
    h1 = jnp.maximum(jnp.dot(x.astype(jnp.bfloat16), prepared["w1"],
                             preferred_element_type=jnp.float32) + prepared["b1"], 0.0)
    h2 = jnp.maximum(jnp.dot(h1.astype(jnp.bfloat16), prepared["w2"],
                             preferred_element_type=jnp.float32) + prepared["b2"], 0.0)
    return jnp.dot(h2.astype(jnp.bfloat16), prepared["w3"],
                   preferred_element_type=jnp.float32) + prepared["b3"]


def init_params(state_size, action_size, seed=0):
    """Deterministic init mimicking PyTorch's Linear default U(-1/sqrt(fan_in), +)."""
    key = jax.random.PRNGKey(seed)
    ks = jax.random.split(key, 6)

    def linear(kw, kb, fan_in, fan_out):
        bound = 1.0 / jnp.sqrt(jnp.float32(fan_in))
        w = jax.random.uniform(kw, (fan_in, fan_out), jnp.float32, -bound, bound)
        b = jax.random.uniform(kb, (1, fan_out), jnp.float32, -bound, bound)
        return w, b

    w1, b1 = linear(ks[0], ks[1], state_size, 64)
    w2, b2 = linear(ks[2], ks[3], 64, 64)
    w3, b3 = linear(ks[4], ks[5], 64, action_size)
    return dict(w1=w1, b1=b1, w2=w2, b2=b2, w3=w3, b3=b3)


def reference_forward_f32(x, p):
    h1 = jnp.maximum(x @ p["w1"] + p["b1"], 0.0)
    h2 = jnp.maximum(h1 @ p["w2"] + p["b2"], 0.0)
    return h2 @ p["w3"] + p["b3"]


def reference_forward_bf16(x, p):
    # Emulates the kernel's numerics: bf16 operands, f32 accumulation.
    c = lambda a: a.astype(jnp.bfloat16)
    h1 = jnp.maximum(jnp.dot(c(x), c(p["w1"]),
                             preferred_element_type=jnp.float32) + p["b1"], 0.0)
    h2 = jnp.maximum(jnp.dot(c(h1), c(p["w2"]),
                             preferred_element_type=jnp.float32) + p["b2"], 0.0)
    return jnp.dot(c(h2), c(p["w3"]), preferred_element_type=jnp.float32) + p["b3"]


if __name__ == "__main__":
    # LunarLander-v2: observation dim 8, action dim 4.
    state_size, action_size = 8, 4
    params = init_params(state_size, action_size, seed=0)
    prepared = prepare_params(params)   # one-time weight prep, reused every call
    key = jax.random.PRNGKey(0)

    # Small act()-style batch: single-tile Pallas path (B padded 2 -> 8 rows).
    x_small = jax.random.normal(key, (2, state_size), jnp.float32)
    out_small = jax.block_until_ready(network_forward(x_small, prepared))
    assert out_small.shape == (2, action_size)
    assert jnp.allclose(out_small, reference_forward_bf16(x_small, params),
                        atol=2e-3, rtol=2e-3)
    assert jnp.allclose(out_small, reference_forward_f32(x_small, params),
                        atol=5e-2, rtol=5e-2)

    # Replay-buffer-style batch: exercises the multi-step batch grid (TB=256, grid=(2,)).
    x_big = jax.random.normal(jax.random.PRNGKey(1), (512, state_size), jnp.float32)
    out_big = jax.block_until_ready(network_forward(x_big, prepared))
    assert out_big.shape == (512, action_size)
    assert jnp.allclose(out_big, reference_forward_bf16(x_big, params),
                        atol=2e-3, rtol=2e-3)

    # Low-latency fused-XLA path for single-environment act(): same numerics.
    out_xla = jax.block_until_ready(network_forward_xla(x_small, prepared))
    assert jnp.allclose(out_xla, out_small, atol=2e-3, rtol=2e-3)

    print("KERNEL_OK")
</pallas_src>

<mosaic_0001>
module attributes {stable_mosaic.version = 11 : i64} {
  func.func @_mlp_kernel(%arg0: i32, %arg1: memref<8x8xf32, #tpu.memory_space<vmem>>, %arg2: memref<8x64xbf16, #tpu.memory_space<vmem>>, %arg3: memref<1x64xf32, #tpu.memory_space<vmem>>, %arg4: memref<64x64xbf16, #tpu.memory_space<vmem>>, %arg5: memref<1x64xf32, #tpu.memory_space<vmem>>, %arg6: memref<64x4xbf16, #tpu.memory_space<vmem>>, %arg7: memref<1x4xf32, #tpu.memory_space<vmem>>, %arg8: memref<8x4xf32, #tpu.memory_space<vmem>>) attributes {dimension_semantics = [#tpu.dimension_semantics<parallel>], iteration_bounds = array<i64: 1>, scalar_prefetch = 0 : i64, scratch_operands = 0 : i64, tpu.core_type = #tpu.core_type<tc>, window_params = [{transform_indices = @transform_0, window_bounds = array<i64: 8, 8>}, {pipeline_mode = #tpu.pipeline_mode<synchronous>, transform_indices = @transform_1, window_bounds = array<i64: 8, 64>}, {pipeline_mode = #tpu.pipeline_mode<synchronous>, transform_indices = @transform_2, window_bounds = array<i64: 1, 64>}, {pipeline_mode = #tpu.pipeline_mode<synchronous>, transform_indices = @transform_3, window_bounds = array<i64: 64, 64>}, {pipeline_mode = #tpu.pipeline_mode<synchronous>, transform_indices = @transform_4, window_bounds = array<i64: 1, 64>}, {pipeline_mode = #tpu.pipeline_mode<synchronous>, transform_indices = @transform_5, window_bounds = array<i64: 64, 4>}, {pipeline_mode = #tpu.pipeline_mode<synchronous>, transform_indices = @transform_6, window_bounds = array<i64: 1, 4>}, {transform_indices = @transform_7, window_bounds = array<i64: 8, 4>}]} {
    %c0 = arith.constant 0 : index
    %c0_0 = arith.constant 0 : index
    %0 = vector.load %arg1[%c0, %c0_0] : memref<8x8xf32, #tpu.memory_space<vmem>>, vector<8x8xf32>
    %1 = arith.truncf %0 : vector<8x8xf32> to vector<8x8xbf16>
    %c0_1 = arith.constant 0 : index
    %c0_2 = arith.constant 0 : index
    %2 = vector.load %arg2[%c0_1, %c0_2] : memref<8x64xbf16, #tpu.memory_space<vmem>>, vector<8x64xbf16>
    %cst = arith.constant dense<0.000000e+00> : vector<8x64xf32>
    %3 = tpu.matmul %1, %2, %cst {dimension_numbers = #tpu.dot_dimension_numbers<[1], [0], [0], [1], [0, 0, 1, 1], [], []>} : vector<8x8xbf16>, vector<8x64xbf16>, vector<8x64xf32> -> vector<8x64xf32>
    %c0_3 = arith.constant 0 : index
    %c0_4 = arith.constant 0 : index
    %4 = vector.load %arg3[%c0_3, %c0_4] : memref<1x64xf32, #tpu.memory_space<vmem>>, vector<1x64xf32>
    %5 = vector.broadcast %4 : vector<1x64xf32> to vector<8x64xf32>
    %6 = arith.addf %3, %5 : vector<8x64xf32>
    %cst_5 = arith.constant 0.000000e+00 : f32
    %7 = vector.broadcast %cst_5 : f32 to vector<8x64xf32>
    %8 = arith.maximumf %6, %7 : vector<8x64xf32>
    %9 = arith.truncf %8 : vector<8x64xf32> to vector<8x64xbf16>
    %c0_6 = arith.constant 0 : index
    %c0_7 = arith.constant 0 : index
    %10 = vector.load %arg4[%c0_6, %c0_7] : memref<64x64xbf16, #tpu.memory_space<vmem>>, vector<64x64xbf16>
    %cst_8 = arith.constant dense<0.000000e+00> : vector<8x64xf32>
    %11 = tpu.matmul %9, %10, %cst_8 {dimension_numbers = #tpu.dot_dimension_numbers<[1], [0], [0], [1], [0, 0, 1, 1], [], []>} : vector<8x64xbf16>, vector<64x64xbf16>, vector<8x64xf32> -> vector<8x64xf32>
    %c0_9 = arith.constant 0 : index
    %c0_10 = arith.constant 0 : index
    %12 = vector.load %arg5[%c0_9, %c0_10] : memref<1x64xf32, #tpu.memory_space<vmem>>, vector<1x64xf32>
    %13 = vector.broadcast %12 : vector<1x64xf32> to vector<8x64xf32>
    %14 = arith.addf %11, %13 : vector<8x64xf32>
    %cst_11 = arith.constant 0.000000e+00 : f32
    %15 = vector.broadcast %cst_11 : f32 to vector<8x64xf32>
    %16 = arith.maximumf %14, %15 : vector<8x64xf32>
    %17 = arith.truncf %16 : vector<8x64xf32> to vector<8x64xbf16>
    %c0_12 = arith.constant 0 : index
    %c0_13 = arith.constant 0 : index
    %18 = vector.load %arg6[%c0_12, %c0_13] : memref<64x4xbf16, #tpu.memory_space<vmem>>, vector<64x4xbf16>
    %cst_14 = arith.constant dense<0.000000e+00> : vector<8x4xf32>
    %19 = tpu.matmul %17, %18, %cst_14 {dimension_numbers = #tpu.dot_dimension_numbers<[1], [0], [0], [1], [0, 0, 1, 1], [], []>} : vector<8x64xbf16>, vector<64x4xbf16>, vector<8x4xf32> -> vector<8x4xf32>
    %c0_15 = arith.constant 0 : index
    %c0_16 = arith.constant 0 : index
    %20 = vector.load %arg7[%c0_15, %c0_16] : memref<1x4xf32, #tpu.memory_space<vmem>>, vector<1x4xf32>
    %21 = vector.broadcast %20 : vector<1x4xf32> to vector<8x4xf32>
    %22 = arith.addf %19, %21 : vector<8x4xf32>
    %c0_17 = arith.constant 0 : index
    %c0_18 = arith.constant 0 : index
    %23 = vector.load %arg8[%c0_17, %c0_18] : memref<8x4xf32, #tpu.memory_space<vmem>>, vector<8x4xf32>
    tpu.vector_store %arg8[%c0_17, %c0_18], %22 {strides = array<i32>} : memref<8x4xf32, #tpu.memory_space<vmem>>, vector<8x4xf32>,
    return
  }
  func.func @transform_0(%arg0: i32) -> (i32, i32) {
    %c0_i32 = arith.constant 0 : i32
    %c0_i32_0 = arith.constant 0 : i32
    return %arg0, %c0_i32 : i32, i32
  }
  func.func @transform_1(%arg0: i32) -> (i32, i32) {
    %c0_i32 = arith.constant 0 : i32
    %c0_i32_0 = arith.constant 0 : i32
    %c0_i32_1 = arith.constant 0 : i32
    return %c0_i32, %c0_i32_0 : i32, i32
  }
  func.func @transform_2(%arg0: i32) -> (i32, i32) {
    %c0_i32 = arith.constant 0 : i32
    %c0_i32_0 = arith.constant 0 : i32
    %c0_i32_1 = arith.constant 0 : i32
    return %c0_i32, %c0_i32_0 : i32, i32
  }
  func.func @transform_3(%arg0: i32) -> (i32, i32) {
    %c0_i32 = arith.constant 0 : i32
    %c0_i32_0 = arith.constant 0 : i32
    %c0_i32_1 = arith.constant 0 : i32
    return %c0_i32, %c0_i32_0 : i32, i32
  }
  func.func @transform_4(%arg0: i32) -> (i32, i32) {
    %c0_i32 = arith.constant 0 : i32
    %c0_i32_0 = arith.constant 0 : i32
    %c0_i32_1 = arith.constant 0 : i32
    return %c0_i32, %c0_i32_0 : i32, i32
  }
  func.func @transform_5(%arg0: i32) -> (i32, i32) {
    %c0_i32 = arith.constant 0 : i32
    %c0_i32_0 = arith.constant 0 : i32
    %c0_i32_1 = arith.constant 0 : i32
    return %c0_i32, %c0_i32_0 : i32, i32
  }
  func.func @transform_6(%arg0: i32) -> (i32, i32) {
    %c0_i32 = arith.constant 0 : i32
    %c0_i32_0 = arith.constant 0 : i32
    %c0_i32_1 = arith.constant 0 : i32
    return %c0_i32, %c0_i32_0 : i32, i32
  }
  func.func @transform_7(%arg0: i32) -> (i32, i32) {
    %c0_i32 = arith.constant 0 : i32
    %c0_i32_0 = arith.constant 0 : i32
    return %arg0, %c0_i32 : i32, i32
  }
}

</mosaic_0001>

<bundles_post_ra>
// kernel: _network_forward.1
= control target key start
LH: loop header
LB: loop body
LE: loop exit
PB: predicated region body
PF: predicated region fallthrough
CT: control target
= control target key end

     0   :  { %vm41_vm0 = vcmask 1043456   ;;  %v326_v0 = vmov 0.0   ;;  %vm327_vm1 = vmmov 0   ;;  %vm37_vm2 = vcmask 64512   ;;  %s412_s1 = inlined_call_operand.vmem [shape: bf16[8,64], index: 1, kind: input, shape index: {}]   ;;  %s413_s0 = inlined_call_operand.vmem [shape: f32[8,8], index: 0, kind: input, shape index: {}]   ;;  %s414_s3 = inlined_call_operand.vmem [shape: bf16[64,64], index: 3, kind: input, shape index: {}]   ;;  %s415_s5 = inlined_call_operand.vmem [shape: bf16[64,4], index: 5, kind: input, shape index: {}]   ;;  %s416_s2 = inlined_call_operand.vmem [shape: f32[1,64], index: 2, kind: input, shape index: {}]   ;;  %s417_s4 = inlined_call_operand.vmem [shape: f32[1,64], index: 4, kind: input, shape index: {}]   ;;  %s418_s6 = inlined_call_operand.vmem [shape: f32[1,4], index: 6, kind: input, shape index: {}]   ;;  %s419_s7 = inlined_call_operand.vmem [shape: f32[8,4], index: 7, kind: output, shape index: {}]  }
   0x1   :  { %286 = vmatprep.subr.bf16.mxu0 %v326_v0  ;;  %v29_v1 = vld [vmem:[%s412_s1] sm:$0xf]  ;;  %288 = vmatprep.mubr.msk.bf16.mxu0 %vm327_vm1, %v326_v0  ;;  %v318_v5 = vld [vmem:[%s414_s3 + $0x18] sm:$0xff]   ;;  %v319_v6 = vld [vmem:[%s414_s3 + $0x10] sm:$0xff]   ;;  %vm126_vm3 = vcmask 523264   ;;  %vm254_vm4 = vcmask 31744  }
   0x2   :  { %v27_v2 = vld [vmem:[%s413_s0] sm:$0xff]  ;;  %v43_v3 = vsel %vm41_vm0, %v29_v1, 0  ;;  %292 = vmatprep.subr.bf16.mxu1 %v326_v0  ;;  %300 = vmatprep.mubr.msk.bf16.mxu1 %vm327_vm1, %v326_v0  ;;  %v320_v7 = vld [vmem:[%s414_s3 + $0x8] sm:$0xff]   ;;  %v322_v9 = vld [vmem:[%s415_s5 + $0x18] sm:$0xff]  }
   0x3   :  { %v28_v4 = vpack.c.bf16 %v27_v2, %v27_v2  ;;  %287 = vmatpush3.bf16.msra.mxu0 %v43_v3  ;;  %293 = vmatpush3.bf16.msra.mxu1 %v318_v5  ;;  %v321_v8 = vld [vmem:[%s414_s3] sm:$0xff]   ;;  %v323_v10 = vld [vmem:[%s415_s5 + $0x10] sm:$0xff]   ;;  %v324_v19 = vld [vmem:[%s415_s5 + $0x8] sm:$0xff]  }
   0x4   :  { %304 = vmatprep.subr.bf16.mxu0 %v326_v0  ;;  %294 = vmatprep.subr.bf16.mxu1 %v326_v0  ;;  %v260_v11 = vld [vmem:[%s416_s2] ss:$0 sm:$0xff] }
   0x5   :  { %v325_v20 = vld [vmem:[%s415_s5] sm:$0xff]  }
   0x6   :  { %289 = vmatmul.mubr.msk.bf16.vlgmr.msra.gmra.mxu0 %vm37_vm2, %v28_v4  ;;  %v262_v21 = vld [vmem:[%s417_s4] ss:$0 sm:$0xff] }
   0x7   :  { %312 = vmatprep.mubr.msk.bf16.mxu0 %vm327_vm1, %v326_v0  ;;  %295 = vmatpush3.bf16.msra.mxu1 %v319_v6  ;;  %v268_v29 = vld [vmem:[%s418_s6] ss:$0 sm:$0xff] }
   0x8   :  { %296 = vmatprep.subr.bf16.mxu1 %v326_v0  ;;  %305 = vmatpush3.bf16.msra.mxu0 %v322_v9 }
   0x9   :  { %306 = vmatprep.subr.bf16.mxu0 %v326_v0 }
   0xb   :  { %297 = vmatpush3.bf16.msra.mxu1 %v320_v7 }
   0xc   :  { %298 = vmatprep.subr.bf16.mxu1 %v326_v0  ;;  %307 = vmatpush3.bf16.msra.mxu0 %v323_v10 }
   0xd   :  { %308 = vmatprep.subr.bf16.mxu0 %v326_v0 }
   0xf   :  { %299 = vmatpush3.bf16.msra.mxu1 %v321_v8 }
  0x10   :  { %309 = vmatpush3.bf16.msra.mxu0 %v324_v19 }
  0x11   :  { %310 = vmatprep.subr.bf16.mxu0 %v326_v0 }
  0x14   :  { %311 = vmatpush3.bf16.msra.mxu0 %v325_v20 }
  0xc6   :  { %v79_v12 = vpop.f32.mrf.mxu0 }
  0xc7   :  { %v80_v13 = vadd.f32 %v260_v11, %v79_v12 }
  0xc8   :  { %v290_v14 = vpop.f32.mrf.mxu0 }
  0xc9   :  { %v85_v15 = vmax.f32 %v80_v13, 0.0 }
  0xca   :  { %v82_v16 = vpop.f32.mrf.mxu0 }
  0xcb   :  { %v86_v17 = vpack.c.bf16 %v85_v15, %v85_v15 }
  0xcc   :  { %v291_v18 = vpop.f32.mrf.mxu0 }
  0xcd   :  { %301 = vmatmul.mubr.msk.bf16.vlgmr.msra.gmra.mxu1 %vm126_vm3, %v86_v17 }
 0x18d   :  { %v164_v22 = vpop.f32.mrf.mxu1 }
 0x18e   :  { %v165_v23 = vadd.f32 %v262_v21, %v164_v22 }
 0x18f   :  { %v302_v24 = vpop.f32.mrf.mxu1 }
 0x190   :  { %v170_v25 = vmax.f32 %v165_v23, 0.0 }
 0x191   :  { %v167_v26 = vpop.f32.mrf.mxu1 }
 0x192   :  { %v171_v27 = vpack.c.bf16 %v170_v25, %v170_v25 }
 0x193   :  { %v303_v28 = vpop.f32.mrf.mxu1 }
 0x194   :  { %313 = vmatmul.mubr.msk.bf16.vlgmr.msra.gmra.mxu0 %vm126_vm3, %v171_v27 }
 0x254   :  { %v248_v30 = vpop.f32.mrf.mxu0 }
 0x255   :  { %v249_v31 = vadd.f32 %v268_v29, %v248_v30 }
 0x256   :  { %v314_v32 = vpop.f32.mrf.mxu0 }
 0x257   :  { %255 = vst.msk [vmem:[%s419_s7] sm:$0xff] %vm254_vm4, %v249_v31 }
 0x258   :  { %v251_v33 = vpop.f32.mrf.mxu0 }
 0x25a   :  { %v315_v34 = vpop.f32.mrf.mxu0 }

</bundles_post_ra>
